<compile_context>
chip_gen: v5e
topology: v5e:2x2
jax: 0.10.0
libtpu: 0.0.40
codegen_flags: <defaults>
</compile_context>

<pallas_src>
import jax
import jax.numpy as jnp
from jax.experimental import pallas as pl
from jax.experimental.pallas import tpu as pltpu


def _quick_gelu_f32(x):
    return x * jax.nn.sigmoid(1.702 * x)


def _mlp_kernel(x_ref, w1_ref, b1_ref, w2_ref, b2_ref, o_ref, acc_ref):
    j = pl.program_id(1)

    @pl.when(j == 0)
    def _():
        acc_ref[...] = jnp.zeros_like(acc_ref)

    # fc1 slab: (tm, H) @ (H, ti) -> f32, + bias slice, quick_gelu in f32.
    h = jnp.dot(x_ref[...], w1_ref[...], preferred_element_type=jnp.float32)
    h = h + b1_ref[...].astype(jnp.float32)
    a = _quick_gelu_f32(h)

    # fc2 partial: (tm, ti) @ (ti, H) accumulated into the f32 scratch.
    acc_ref[...] += jnp.dot(a.astype(w2_ref.dtype), w2_ref[...],
                            preferred_element_type=jnp.float32)

    # Epilogue: add fc2 bias exactly once and write out.
    @pl.when(j == pl.num_programs(1) - 1)
    def _():
        o_ref[...] = (acc_ref[...]
                      + b2_ref[...].astype(jnp.float32)).astype(o_ref.dtype)


def _round_up(x, m):
    return (x + m - 1) // m * m


def step3_vision_mlp(x, w1, b1, w2, b2, *, tm=256, ti=512):
    """x: (..., hidden). w1: (H, I), b1: (I,), w2: (I, H), b2: (H,)."""
    *lead, H = x.shape
    I = w1.shape[1]
    M = 1
    for d in lead:
        M *= d
    x2d = x.reshape(M, H)

    # Sublane granularity depends on dtype packing (f32: 8, bf16/f16: 16).
    itemsize = jnp.dtype(x.dtype).itemsize
    sub = 8 * max(1, 4 // max(1, itemsize))

    tm_eff = min(tm, _round_up(M, sub))
    ti_eff = min(ti, _round_up(I, 128))

    m_pad = _round_up(M, tm_eff)
    i_pad = _round_up(I, ti_eff)

    # Pad tokens (rows) and intermediate dim with zeros; padded I columns
    # produce a == quick_gelu(0) == 0 so they contribute nothing to fc2.
    if m_pad != M:
        x2d = jnp.pad(x2d, ((0, m_pad - M), (0, 0)))
    if i_pad != I:
        w1 = jnp.pad(w1, ((0, 0), (0, i_pad - I)))
        b1 = jnp.pad(b1, ((0, i_pad - I),))
        w2 = jnp.pad(w2, ((0, i_pad - I), (0, 0)))

    b1_2d = b1.reshape(1, i_pad)
    b2_2d = b2.reshape(1, H)

    grid = (m_pad // tm_eff, i_pad // ti_eff)

    out2d = pl.pallas_call(
        _mlp_kernel,
        out_shape=jax.ShapeDtypeStruct((m_pad, H), x.dtype),
        grid_spec=pltpu.PrefetchScalarGridSpec(
            num_scalar_prefetch=0,
            grid=grid,
            in_specs=[
                pl.BlockSpec((tm_eff, H), lambda i, j: (i, 0)),    # x rows
                pl.BlockSpec((H, ti_eff), lambda i, j: (0, j)),    # W1 col tile
                pl.BlockSpec((1, ti_eff), lambda i, j: (0, j)),    # b1 slice
                pl.BlockSpec((ti_eff, H), lambda i, j: (j, 0)),    # W2 row tile
                pl.BlockSpec((1, H), lambda i, j: (0, 0)),         # b2
            ],
            out_specs=pl.BlockSpec((tm_eff, H), lambda i, j: (i, 0)),
            scratch_shapes=[pltpu.VMEM((tm_eff, H), jnp.float32)],
        ),
        compiler_params=pltpu.CompilerParams(
            dimension_semantics=("parallel", "arbitrary")),
    )(x2d, w1, b1_2d, w2, b2_2d)

    if m_pad != M:
        out2d = out2d[:M]
    return out2d.reshape(*lead, H)


def _reference(x, w1, b1, w2, b2):
    x32 = x.astype(jnp.float32)
    h = jnp.einsum("...h,hi->...i", x32, w1.astype(jnp.float32)) + b1
    a = h * jax.nn.sigmoid(1.702 * h)
    return jnp.einsum("...i,ih->...h", a, w2.astype(jnp.float32)) + b2


if __name__ == "__main__":
    # Small synthetic config: hidden_size=32, intermediate_size=128,
    # batch=2, seq=8 tokens.
    B, S, H, I = 2, 8, 32, 128

    key = jax.random.PRNGKey(0)
    kx, k1, kb1, k2, kb2 = jax.random.split(key, 5)

    x = jax.random.normal(kx, (B, S, H), dtype=jnp.float32)
    # Deterministic "Linear" params (stored as (in, out) for x @ W).
    w1 = jax.random.normal(k1, (H, I), dtype=jnp.float32) * 0.02
    b1 = jax.random.normal(kb1, (I,), dtype=jnp.float32) * 0.02
    w2 = jax.random.normal(k2, (I, H), dtype=jnp.float32) * 0.02
    b2 = jax.random.normal(kb2, (H,), dtype=jnp.float32) * 0.02

    # 1) f32 path, even token count.
    out = jax.block_until_ready(step3_vision_mlp(x, w1, b1, w2, b2))
    ref = _reference(x, w1, b1, w2, b2)
    assert out.shape == (B, S, H)
    assert jnp.allclose(out, ref, atol=1e-5, rtol=1e-5), "f32 mismatch"

    # 2) Ragged token count (M=13, not a multiple of the tile) exercises padding.
    x_odd = x[:1, :13 if S >= 13 else S]  # (1, min(13,S), H)
    x_odd = jax.random.normal(kx, (1, 13, H), dtype=jnp.float32)
    out_odd = jax.block_until_ready(step3_vision_mlp(x_odd, w1, b1, w2, b2))
    ref_odd = _reference(x_odd, w1, b1, w2, b2)
    assert out_odd.shape == (1, 13, H)
    assert jnp.allclose(out_odd, ref_odd, atol=1e-5, rtol=1e-5), "ragged mismatch"

    # 3) bf16 weights/activations (MXU-friendly path), f32 accumulation inside.
    out_bf16 = jax.block_until_ready(
        step3_vision_mlp(x.astype(jnp.bfloat16), w1.astype(jnp.bfloat16),
                         b1.astype(jnp.bfloat16), w2.astype(jnp.bfloat16),
                         b2.astype(jnp.bfloat16)))
    assert out_bf16.shape == (B, S, H)
    assert jnp.allclose(out_bf16.astype(jnp.float32), ref,
                        atol=5e-3, rtol=5e-2), "bf16 mismatch"

    print("KERNEL_OK")
</pallas_src>

<mosaic_0001>
module attributes {stable_mosaic.version = 11 : i64} {
  func.func @_mlp_kernel(%arg0: i32, %arg1: i32, %arg2: memref<16x32xf32, #tpu.memory_space<vmem>>, %arg3: memref<32x128xf32, #tpu.memory_space<vmem>>, %arg4: memref<1x128xf32, #tpu.memory_space<vmem>>, %arg5: memref<128x32xf32, #tpu.memory_space<vmem>>, %arg6: memref<1x32xf32, #tpu.memory_space<vmem>>, %arg7: memref<16x32xf32, #tpu.memory_space<vmem>>, %arg8: memref<16x32xf32, #tpu.memory_space<vmem>>) attributes {dimension_semantics = [#tpu.dimension_semantics<parallel>, #tpu.dimension_semantics<arbitrary>], iteration_bounds = array<i64: 1, 1>, scalar_prefetch = 0 : i64, scratch_operands = 1 : i64, tpu.core_type = #tpu.core_type<tc>, window_params = [{transform_indices = @transform_0, window_bounds = array<i64: 16, 32>}, {transform_indices = @transform_1, window_bounds = array<i64: 32, 128>}, {transform_indices = @transform_2, window_bounds = array<i64: 1, 128>}, {transform_indices = @transform_3, window_bounds = array<i64: 128, 32>}, {pipeline_mode = #tpu.pipeline_mode<synchronous>, transform_indices = @transform_4, window_bounds = array<i64: 1, 32>}, {transform_indices = @transform_5, window_bounds = array<i64: 16, 32>}]} {
    %c0_i32 = arith.constant 0 : i32
    %0 = arith.cmpi eq, %arg1, %c0_i32 : i32
    %1 = arith.extui %0 : i1 to i32
    %c0_i32_0 = arith.constant 0 : i32
    %2 = arith.cmpi ne, %1, %c0_i32_0 : i32
    scf.if %2 {
      %cst_17 = arith.constant 0.000000e+00 : f32
      %25 = vector.broadcast %cst_17 : f32 to vector<16x32xf32>
      %c0_18 = arith.constant 0 : index
      %c0_19 = arith.constant 0 : index
      %26 = vector.load %arg8[%c0_18, %c0_19] : memref<16x32xf32, #tpu.memory_space<vmem>>, vector<16x32xf32>
      tpu.vector_store %arg8[%c0_18, %c0_19], %25 {strides = array<i32>} : memref<16x32xf32, #tpu.memory_space<vmem>>, vector<16x32xf32>,
    } else {
    }
    %c0 = arith.constant 0 : index
    %c0_1 = arith.constant 0 : index
    %3 = vector.load %arg2[%c0, %c0_1] : memref<16x32xf32, #tpu.memory_space<vmem>>, vector<16x32xf32>
    %c0_2 = arith.constant 0 : index
    %c0_3 = arith.constant 0 : index
    %4 = vector.load %arg3[%c0_2, %c0_3] : memref<32x128xf32, #tpu.memory_space<vmem>>, vector<32x128xf32>
    %cst = arith.constant dense<0.000000e+00> : vector<16x128xf32>
    %5 = tpu.matmul %3, %4, %cst {dimension_numbers = #tpu.dot_dimension_numbers<[1], [0], [0], [1], [0, 0, 1, 1], [], []>} : vector<16x32xf32>, vector<32x128xf32>, vector<16x128xf32> -> vector<16x128xf32>
    %c0_4 = arith.constant 0 : index
    %c0_5 = arith.constant 0 : index
    %6 = vector.load %arg4[%c0_4, %c0_5] : memref<1x128xf32, #tpu.memory_space<vmem>>, vector<1x128xf32>
    %7 = vector.broadcast %6 : vector<1x128xf32> to vector<16x128xf32>
    %8 = arith.addf %5, %7 : vector<16x128xf32>
    %cst_6 = arith.constant 1.702000e+00 : f32
    %9 = vector.broadcast %cst_6 : f32 to vector<16x128xf32>
    %10 = arith.mulf %9, %8 : vector<16x128xf32>
    %11 = arith.negf %10 : vector<16x128xf32>
    %12 = math.exp %11 : vector<16x128xf32>
    %cst_7 = arith.constant 1.000000e+00 : f32
    %13 = vector.broadcast %cst_7 : f32 to vector<16x128xf32>
    %14 = arith.addf %13, %12 : vector<16x128xf32>
    %15 = arith.divf %13, %14 : vector<16x128xf32>
    %16 = arith.mulf %8, %15 : vector<16x128xf32>
    %c0_8 = arith.constant 0 : index
    %c0_9 = arith.constant 0 : index
    %17 = vector.load %arg8[%c0_8, %c0_9] : memref<16x32xf32, #tpu.memory_space<vmem>>, vector<16x32xf32>
    %c0_10 = arith.constant 0 : index
    %c0_11 = arith.constant 0 : index
    %18 = vector.load %arg5[%c0_10, %c0_11] : memref<128x32xf32, #tpu.memory_space<vmem>>, vector<128x32xf32>
    %cst_12 = arith.constant dense<0.000000e+00> : vector<16x32xf32>
    %19 = tpu.matmul %16, %18, %cst_12 {dimension_numbers = #tpu.dot_dimension_numbers<[1], [0], [0], [1], [0, 0, 1, 1], [], []>} : vector<16x128xf32>, vector<128x32xf32>, vector<16x32xf32> -> vector<16x32xf32>
    %20 = arith.addf %17, %19 : vector<16x32xf32>
    %c0_13 = arith.constant 0 : index
    %c0_14 = arith.constant 0 : index
    %21 = vector.load %arg8[%c0_13, %c0_14] : memref<16x32xf32, #tpu.memory_space<vmem>>, vector<16x32xf32>
    tpu.vector_store %arg8[%c0_13, %c0_14], %20 {strides = array<i32>} : memref<16x32xf32, #tpu.memory_space<vmem>>, vector<16x32xf32>,
    %c0_i32_15 = arith.constant 0 : i32
    %22 = arith.cmpi eq, %arg1, %c0_i32_15 : i32
    %23 = arith.extui %22 : i1 to i32
    %c0_i32_16 = arith.constant 0 : i32
    %24 = arith.cmpi ne, %23, %c0_i32_16 : i32
    scf.if %24 {
      %c0_17 = arith.constant 0 : index
      %c0_18 = arith.constant 0 : index
      %25 = vector.load %arg8[%c0_17, %c0_18] : memref<16x32xf32, #tpu.memory_space<vmem>>, vector<16x32xf32>
      %c0_19 = arith.constant 0 : index
      %c0_20 = arith.constant 0 : index
      %26 = vector.load %arg6[%c0_19, %c0_20] : memref<1x32xf32, #tpu.memory_space<vmem>>, vector<1x32xf32>
      %27 = vector.broadcast %26 : vector<1x32xf32> to vector<16x32xf32>
      %28 = arith.addf %25, %27 : vector<16x32xf32>
      %c0_21 = arith.constant 0 : index
      %c0_22 = arith.constant 0 : index
      %29 = vector.load %arg7[%c0_21, %c0_22] : memref<16x32xf32, #tpu.memory_space<vmem>>, vector<16x32xf32>
      tpu.vector_store %arg7[%c0_21, %c0_22], %28 {strides = array<i32>} : memref<16x32xf32, #tpu.memory_space<vmem>>, vector<16x32xf32>,
    } else {
    }
    return
  }
  func.func @transform_0(%arg0: i32, %arg1: i32) -> (i32, i32) {
    %c0_i32 = arith.constant 0 : i32
    %c0_i32_0 = arith.constant 0 : i32
    return %arg0, %c0_i32 : i32, i32
  }
  func.func @transform_1(%arg0: i32, %arg1: i32) -> (i32, i32) {
    %c0_i32 = arith.constant 0 : i32
    %c0_i32_0 = arith.constant 0 : i32
    return %c0_i32, %arg1 : i32, i32
  }
  func.func @transform_2(%arg0: i32, %arg1: i32) -> (i32, i32) {
    %c0_i32 = arith.constant 0 : i32
    %c0_i32_0 = arith.constant 0 : i32
    return %c0_i32, %arg1 : i32, i32
  }
  func.func @transform_3(%arg0: i32, %arg1: i32) -> (i32, i32) {
    %c0_i32 = arith.constant 0 : i32
    %c0_i32_0 = arith.constant 0 : i32
    return %arg1, %c0_i32 : i32, i32
  }
  func.func @transform_4(%arg0: i32, %arg1: i32) -> (i32, i32) {
    %c0_i32 = arith.constant 0 : i32
    %c0_i32_0 = arith.constant 0 : i32
    %c0_i32_1 = arith.constant 0 : i32
    return %c0_i32, %c0_i32_0 : i32, i32
  }
  func.func @transform_5(%arg0: i32, %arg1: i32) -> (i32, i32) {
    %c0_i32 = arith.constant 0 : i32
    %c0_i32_0 = arith.constant 0 : i32
    return %arg0, %c0_i32 : i32, i32
  }
}

</mosaic_0001>

<bundles_post_ra>
// kernel: tpu_custom_call.1
= control target key start
LH: loop header
LB: loop body
LE: loop exit
PB: predicated region body
PF: predicated region fallthrough
CT: control target
= control target key end

     0   :  { %s363_s0 = inlined_call_operand.vmem [shape: f32[16,32], index: 0, kind: input, shape index: {}]   ;;  %s364_s1 = inlined_call_operand.vmem [shape: f32[32,128], index: 1, kind: input, shape index: {}]   ;;  %s365_s2 = inlined_call_operand.vmem [shape: f32[1,128], index: 2, kind: input, shape index: {}]   ;;  %s366_s3 = inlined_call_operand.vmem [shape: f32[128,32], index: 3, kind: input, shape index: {}]   ;;  %s367_s4 = inlined_call_operand.vmem [shape: f32[1,32], index: 4, kind: input, shape index: {}]   ;;  %s368_s5 = inlined_call_operand.hbm [shape: f32[16,32], index: 5, kind: output, shape index: {}]  }
   0x1   :  { %v33_v0 = vld [vmem:[%s364_s1 + $0x18] sm:$0xff]  ;;  %v32_v1 = vld [vmem:[%s364_s1 + $0x10] sm:$0xff]  ;;  %v31_v2 = vld [vmem:[%s364_s1 + $0x8] sm:$0xff] }
   0x2   :  { %57 = vmatpush.msra.mxu0 %v33_v0 }
   0x3   :  { %10 = vsyncpa [#allocation4], 0  ;;  %v30_v3 = vld [vmem:[%s364_s1] sm:$0xff]  ;;  %vm25_vm0 = vcmask 261120   ;;  %v29_v5 = vld [vmem:[%s363_s0 + $0x8] sm:$0xff]  ;;  %v246_v30 = vmov 0.0  }
   0x4   :  { %58 = vmatpush.msra.mxu0 %v32_v1  ;;  %v28_v4 = vld [vmem:[%s363_s0] sm:$0xff]  ;;  %v127_v6 = vld [vmem:[%s366_s3 + $0x78] sm:$0xff]  ;;  %v126_v7 = vld [vmem:[%s366_s3 + $0x70] sm:$0xff]  ;;  %26 = vst.msk [vmem:[#allocation2] sm:$0xff] %vm25_vm0, %v246_v30  ;;  %s247_s10 = smov [#allocation3]   ;;  %s174_s14 = sshll.u32 %s368_s5, 4  ;;  %s175_s14 = int_to_ptr.hbm [resolvable:$true] %s174_s14 }
   0x5   :  { %128 = vmatpush.msra.mxu1 %v127_v6  ;;  %190 = vmatpush.msra.mxu2 %v127_v6  ;;  %v125_v8 = vld [vmem:[%s366_s3 + $0x68] sm:$0xff]  ;;  %v124_v9 = vld [vmem:[%s366_s3 + $0x60] sm:$0xff]  ;;  %v123_v10 = vld [vmem:[%s366_s3 + $0x58] sm:$0xff]  ;;  %27 = vst.msk [vmem:[#allocation2 + $0x8] sm:$0xff] %vm25_vm0, %v246_v30  ;;  %s172_s11 = sshll.u32 %s247_s10, 4  ;;  %s249_s15 = smov 8   ;;  %s173_s11 = int_to_ptr.vmem [resolvable:$true] %s172_s11 }
   0x6   :  { %59 = vmatpush.msra.mxu0 %v31_v2  ;;  %v122_v11 = vld [vmem:[%s366_s3 + $0x50] sm:$0xff]  ;;  %v121_v12 = vld [vmem:[%s366_s3 + $0x48] sm:$0xff]  ;;  %v120_v13 = vld [vmem:[%s366_s3 + $0x40] sm:$0xff] }
   0x7   :  { %129 = vmatpush.msra.mxu1 %v126_v7  ;;  %191 = vmatpush.msra.mxu2 %v126_v7  ;;  %v119_v14 = vld [vmem:[%s366_s3 + $0x38] sm:$0xff]  ;;  %v118_v15 = vld [vmem:[%s366_s3 + $0x30] sm:$0xff]  ;;  %v117_v16 = vld [vmem:[%s366_s3 + $0x28] sm:$0xff] }
   0x8   :  { %60 = vmatpush.msra.mxu0 %v30_v3  ;;  %v116_v17 = vld [vmem:[%s366_s3 + $0x20] sm:$0xff]  ;;  %v115_v18 = vld [vmem:[%s366_s3 + $0x18] sm:$0xff]  ;;  %v114_v19 = vld [vmem:[%s366_s3 + $0x10] sm:$0xff] }
   0x9   :  { %186 = vmatmul.msk.f32.vlgmr.msra.gmra.mxu0 %vm25_vm0, %v28_v4  ;;  %130 = vmatpush.msra.mxu1 %v125_v8  ;;  %v210_v20 = vld [vmem:[%s365_s2] ss:$0 sm:$0xff]  ;;  %v113_v21 = vld [vmem:[%s366_s3 + $0x8] sm:$0xff] }
   0xa   :  { %192 = vmatpush.msra.mxu2 %v125_v8  ;;  %v112_v22 = vld [vmem:[%s366_s3] sm:$0xff] }
   0xb   :  { %131 = vmatpush.msra.mxu1 %v124_v9  ;;  %v110_v58 = vld [vmem:[#allocation2] sm:$0xff] }
   0xc   :  { %193 = vmatpush.msra.mxu2 %v124_v9  ;;  %v211_v61 = vld [vmem:[%s367_s4] ss:$0 sm:$0xff]  ;;  %v111_v0 = vld [vmem:[#allocation2 + $0x8] sm:$0xff]  ;;  %s248_s4 = smov 128  }
   0xd   :  { %132 = vmatpush.msra.mxu1 %v123_v10 }
   0xe   :  { %194 = vmatpush.msra.mxu2 %v123_v10 }
   0xf   :  { %133 = vmatpush.msra.mxu1 %v122_v11 }
  0x10   :  { %195 = vmatpush.msra.mxu2 %v122_v11 }
  0x11   :  { %187 = vmatmul.msk.f32.gmra.mxu0 %vm25_vm0, %v29_v5  ;;  %134 = vmatpush.msra.mxu1 %v121_v12 }
  0x12   :  { %196 = vmatpush.msra.mxu2 %v121_v12 }
  0x13   :  { %135 = vmatpush.msra.mxu1 %v120_v13 }
  0x14   :  { %197 = vmatpush.msra.mxu2 %v120_v13 }
  0x15   :  { %136 = vmatpush.msra.mxu1 %v119_v14 }
  0x16   :  { %198 = vmatpush.msra.mxu2 %v119_v14 }
  0x17   :  { %137 = vmatpush.msra.mxu1 %v118_v15 }
  0x18   :  { %199 = vmatpush.msra.mxu2 %v118_v15 }
  0x19   :  { %138 = vmatpush.msra.mxu1 %v117_v16 }
  0x1a   :  { %200 = vmatpush.msra.mxu2 %v117_v16 }
  0x1b   :  { %139 = vmatpush.msra.mxu1 %v116_v17 }
  0x1c   :  { %201 = vmatpush.msra.mxu2 %v116_v17 }
  0x1d   :  { %140 = vmatpush.msra.mxu1 %v115_v18 }
  0x1e   :  { %202 = vmatpush.msra.mxu2 %v115_v18 }
  0x1f   :  { %141 = vmatpush.msra.mxu1 %v114_v19 }
  0x20   :  { %203 = vmatpush.msra.mxu2 %v114_v19 }
  0x21   :  { %142 = vmatpush.msra.mxu1 %v113_v21 }
  0x22   :  { %204 = vmatpush.msra.mxu2 %v113_v21 }
  0x23   :  { %143 = vmatpush.msra.mxu1 %v112_v22 }
  0x24   :  { %205 = vmatpush.msra.mxu2 %v112_v22 }
  0x86   :  { %v62_v23 = vpop.f32.mrf.mxu0 }
  0x87   :  { %v63_v24 = vadd.f32 %v210_v20, %v62_v23 }
  0x89   :  { %v188_v25 = vmul.f32 -1.702, %v63_v24 }
  0x8b   :  { %v72_v26 = vmul.f32 1.442695, %v188_v25 }
  0x8d   :  { %212 = vpow2.f32 %v72_v26 }
  0x8e   :  { %v65_v27 = vpop.f32.mrf.mxu0 }
  0x8f   :  { %v66_v28 = vadd.f32 %v210_v20, %v65_v27 }
  0x91   :  { %v189_v29 = vmul.f32 -1.702, %v66_v28 }
  0x93   :  { %v213_v31 = vpop.eup %212  ;;  %v74_v32 = vmul.f32 1.442695, %v189_v29 }
  0x94   :  { %v76_v33 = vadd.f32 1.0, %v213_v31 }
  0x95   :  { %214 = vpow2.f32 %v74_v32 }
  0x96   :  { %216 = vrcp.f32 %v76_v33  ;;  %v89_v39 = vand.u32 2147483648, %v76_v33  ;;  %v87_v41 = vand.u32 2147483647, %v76_v33  ;;  %vm83_vm2 = vweird.f32 %v76_v33 }
  0x98   :  { %v90_v44 = vor.u32 1.1754944e-38, %v89_v39  ;;  %vm88_vm4 = vcmp.eq.f32.partialorder %v87_v41, 8.507059e+37 }
  0x9b   :  { %v215_v34 = vpop.eup %214 }
  0x9c   :  { %v217_v35 = vpop.eup %216  ;;  %v77_v36 = vadd.f32 1.0, %v215_v34 }
  0x9d   :  { %v79_v37 = vmul.f32 %v217_v35, %v76_v33  ;;  %vm84_vm1 = vweird.f32 %v217_v35 }
  0x9e   :  { %218 = vrcp.f32 %v77_v36  ;;  %vm85_vm3 = vmor %vm83_vm2, %vm84_vm1  ;;  %v104_v50 = vand.u32 2147483648, %v77_v36  ;;  %v102_v52 = vand.u32 2147483647, %v77_v36  ;;  %vm98_vm6 = vweird.f32 %v77_v36 }
  0x9f   :  { %v80_v38 = vsub.f32 1.0, %v79_v37 }
  0xa0   :  { %v105_v54 = vor.u32 1.1754944e-38, %v104_v50  ;;  %vm103_vm8 = vcmp.eq.f32.partialorder %v102_v52, 8.507059e+37 }
  0xa1   :  { %v81_v40 = vmul.f32 %v217_v35, %v80_v38 }
  0xa3   :  { %v82_v42 = vadd.f32 %v217_v35, %v81_v40 }
  0xa4   :  { %v219_v43 = vpop.eup %218 }
  0xa5   :  { %v86_v45 = vsel %vm85_vm3, %v217_v35, %v82_v42  ;;  %v94_v46 = vmul.f32 %v219_v43, %v77_v36  ;;  %vm99_vm5 = vweird.f32 %v219_v43 }
  0xa6   :  { %v91_v47 = vsel %vm88_vm4, %v90_v44, %v86_v45  ;;  %vm100_vm7 = vmor %vm98_vm6, %vm99_vm5 }
  0xa7   :  { %v108_v48 = vmul.f32 %v91_v47, %v63_v24  ;;  %v95_v49 = vsub.f32 1.0, %v94_v46 }
  0xa9   :  { %144 = vmatmul.f32.vlgmr.msra.gmra.mxu1 %v108_v48  ;;  %v96_v51 = vmul.f32 %v219_v43, %v95_v49 }
  0xab   :  { %v97_v53 = vadd.f32 %v219_v43, %v96_v51 }
  0xad   :  { %v101_v55 = vsel %vm100_vm7, %v219_v43, %v97_v53 }
  0xae   :  { %v106_v56 = vsel %vm103_vm8, %v105_v54, %v101_v55 }
  0xaf   :  { %v109_v57 = vmul.f32 %v106_v56, %v66_v28 }
  0xb1   :  { %147 = vmatmul.f32.vlgmr.msra.gmra.mxu2 %v109_v57 }
 0x126   :  { %v145_v59 = vpop.f32.mrf.mxu1 }
 0x127   :  { %v151_v60 = vadd.f32 %v145_v59, %v110_v58 }
 0x129   :  { %153 = vst.msk [vmem:[#allocation2] sm:$0xff] %vm25_vm0, %v151_v60 }
 0x130   :  { %v158_v62 = vld [vmem:[#allocation2] sm:$0xff] }
 0x131   :  { %v164_v63 = vadd.f32 %v211_v61, %v158_v62 }
 0x133   :  { %166 = vst.msk [vmem:[#allocation3] sm:$0xff] %vm25_vm0, %v164_v63 }
 0x134   :  { %v148_v1 = vpop.f32.mrf.mxu2 }
 0x135   :  { %v152_v2 = vadd.f32 %v148_v1, %v111_v0 }
 0x137   :  { %154 = vst.msk [vmem:[#allocation2 + $0x8] sm:$0xff] %vm25_vm0, %v152_v2 }
 0x13e   :  { %v159_v3 = vld [vmem:[#allocation2 + $0x8] sm:$0xff] }
 0x13f   :  { %v165_v4 = vadd.f32 %v211_v61, %v159_v3 }
 0x141   :  { %167 = vst.msk [vmem:[#allocation3 + $0x8] sm:$0xff] %vm25_vm0, %v165_v4 }
 0x142   :  { %180 = dma.vmem_to_hbm [thread:$0]  %s173_s11, 256, %s175_s14, [#allocation4], %s248_s4, %s248_s4, %s249_s15  }
 0x143   :  { %244 = dma.done.wait [#allocation4], 256  }
 0x144   :  { %245 = vsyncadd [#allocation4], 4294967040 }
 0x145   :  { %185 = vsyncpa [#allocation4], 1 }

</bundles_post_ra>
